<compile_context>
chip_gen: v6e
topology: v6e:2x2x1
jax: 0.10.0
libtpu: 0.0.40
codegen_flags: <defaults>
</compile_context>

<pallas_src>
import functools

import jax
import jax.numpy as jnp
from jax import lax
from jax.experimental import pallas as pl
from jax.experimental.pallas import tpu as pltpu


def _round_up(x, m):
    return ((x + m - 1) // m) * m


def _vmem_capacity_bytes():
    try:
        return int(pltpu.get_tpu_info().vmem_capacity_bytes)
    except Exception:
        return 64 << 20  # conservative fallback (v7x per-TensorCore VMEM)


def _is_v5e():
    try:
        kind = jax.devices()[0].device_kind.lower()
        return ("v5 lite" in kind) or ("v5e" in kind) or ("v5litepod" in kind)
    except Exception:
        return False


def _block_spec(shape, index_map, buffers=None):
    """BlockSpec with an optional explicit buffer count; falls back to the
    default (double-buffered) spec if this JAX version lacks pipeline_mode."""
    if buffers is None:
        return pl.BlockSpec(shape, index_map)
    try:
        return pl.BlockSpec(shape, index_map, pipeline_mode=pl.Buffered(buffers))
    except TypeError:
        return pl.BlockSpec(shape, index_map)


# ----------------------------- kernels --------------------------------------


def _residual_linear_resident_kernel(x_ref, w_ref, b_ref, o_ref, *, matmul_dtype):
    # x_ref: (TM, Dp) input row tile
    # w_ref: (Dp, Dp) torch-layout weight (out, in), resident in VMEM, already
    #        stored in the matmul dtype (pre-cast in the wrapper).
    # b_ref: (1,  Dp) bias (f32)
    # o_ref: (TM, Dp) output row tile
    x = x_ref[...]
    xm = x if matmul_dtype is None else x.astype(matmul_dtype)
    # Contract x's feature axis (1) with W's in-features axis (1) == x @ W.T.
    y = lax.dot_general(
        xm, w_ref[...],
        dimension_numbers=(((1,), (1,)), ((), ())),
        preferred_element_type=jnp.float32,
    )
    # Residual + bias in f32, single fused lane-dense store.
    o_ref[...] = (x.astype(jnp.float32) + y + b_ref[...]).astype(o_ref.dtype)


def _residual_linear_ktiled_kernel(xk_ref, xfull_ref, w_ref, b_ref, o_ref,
                                   acc_ref, *, matmul_dtype):
    # Streaming (P3) fallback for hidden sizes whose resident weight would not
    # fit VMEM (e.g. v7x, 64 MiB/TC).
    # xk_ref:    (TM, TK)   x K-slab for the matmul
    # xfull_ref: (TM, Dp)   full x rows (residual); index_map constant over k
    # w_ref:     (Dp, TK)   weight K-slab (out-features x in-feature slab)
    # b_ref:     (1,  Dp)   bias (f32)
    # acc_ref:   (TM, Dp)   f32 accumulator scratch
    k = pl.program_id(1)

    @pl.when(k == 0)
    def _():
        acc_ref[...] = jnp.zeros_like(acc_ref)

    x_k = xk_ref[...]
    if matmul_dtype is not None:
        x_k = x_k.astype(matmul_dtype)
    acc_ref[...] += lax.dot_general(
        x_k, w_ref[...],
        dimension_numbers=(((1,), (1,)), ((), ())),
        preferred_element_type=jnp.float32,
    )

    @pl.when(k == pl.num_programs(1) - 1)
    def _():
        o_ref[...] = (xfull_ref[...].astype(jnp.float32)
                      + acc_ref[...] + b_ref[...]).astype(o_ref.dtype)


# ----------------------------- wrapper ---------------------------------------


def residual_block(x, weight, bias, *, tm_target=None, matmul_dtype="auto",
                   force_streaming=False, x_buffers=2):
    """x: (B, S, D); weight: (D, D) torch-style (out, in); bias: (D,).

    Computes x + (x @ weight.T + bias) == ResidualBlock(Linear(D, D))(x).
    """
    B, S, D = x.shape
    M = B * S
    D_pad = _round_up(D, 128)

    vmem_cap = _vmem_capacity_bytes()
    budget = int(0.75 * vmem_cap)        # leave headroom for compiler scratch

    # bf16 operands (f32 accumulation, f32 residual/bias) when MXU-bound or on
    # v5e (no fast f32 MXU/VPU path); exact f32 for small mem-bound D.
    if isinstance(matmul_dtype, str) and matmul_dtype == "auto":
        matmul_dtype = jnp.bfloat16 if (D_pad >= 512 or _is_v5e()) else None

    # Row tile: amortize per-step overhead, fit VMEM, and keep >= 2 row tiles
    # so the "parallel" axis can occupy both TensorCores on v7x.
    if tm_target is None:
        tm_target = 1024 if vmem_cap >= (100 << 20) else 512
    TM = min(int(tm_target), max(8, _round_up(-(-M // 2), 8)))
    TM = _round_up(TM, 8)

    x_item = jnp.dtype(x.dtype).itemsize
    out_item = x_item
    w_item = (jnp.dtype(matmul_dtype).itemsize if matmul_dtype is not None
              else jnp.dtype(weight.dtype).itemsize)

    # K tile for the streaming fallback: multiple of 128 dividing D_pad, <=512.
    lanes = D_pad // 128
    tk_blocks = 1
    for cand in range(min(lanes, 4), 0, -1):
        if lanes % cand == 0:
            tk_blocks = cand
            break
    TK = tk_blocks * 128

    def resident_bytes(tm):
        return (x_buffers * tm * D_pad * x_item       # x tiles
                + 2 * tm * D_pad * out_item           # out tiles
                + 1 * D_pad * D_pad * w_item          # W (single-buffered)
                + D_pad * 4)                          # bias

    def streaming_bytes(tm):
        return (2 * tm * TK * x_item                  # x K-slabs
                + 2 * tm * D_pad * x_item             # full x rows (residual)
                + 2 * D_pad * TK * w_item             # W slabs
                + 2 * tm * D_pad * out_item           # out tiles
                + tm * D_pad * 4                      # f32 accumulator
                + D_pad * 4)                          # bias

    use_streaming = force_streaming or resident_bytes(TM) > budget
    sizer = streaming_bytes if use_streaming else resident_bytes
    while sizer(TM) > budget and TM > 8:
        TM = max(8, _round_up(TM // 2, 8))

    grid_m = pl.cdiv(M, TM)

    # --- prepare operands (no M-axis pad/slice; feature pad only if needed) --
    x2d = x.reshape(M, D)
    if D_pad != D:
        x2d = jnp.pad(x2d, ((0, 0), (0, D_pad - D)))
        w_p = jnp.pad(weight, ((0, D_pad - D), (0, D_pad - D)))
        b_p = jnp.pad(bias, (0, D_pad - D))
    else:
        w_p, b_p = weight, bias
    if matmul_dtype is not None:
        w_p = w_p.astype(matmul_dtype)   # one-time pre-cast, not per grid step
    b2d = b_p.reshape(1, D_pad).astype(jnp.float32)

    vmem_needed = sizer(TM)
    vmem_limit = int(min(vmem_cap, max(vmem_needed + (4 << 20), 32 << 20)))

    cost = pl.CostEstimate(
        flops=2 * M * D_pad * D_pad + 2 * M * D_pad,
        transcendentals=0,
        bytes_accessed=(2 * M * D_pad * x_item
                        + D_pad * D_pad * w_item + D_pad * 4),
    )

    if not use_streaming:
        kernel = functools.partial(_residual_linear_resident_kernel,
                                   matmul_dtype=matmul_dtype)
        out2d = pl.pallas_call(
            kernel,
            out_shape=jax.ShapeDtypeStruct((M, D_pad), x.dtype),
            grid_spec=pltpu.PrefetchScalarGridSpec(
                num_scalar_prefetch=0,
                grid=(grid_m,),
                in_specs=[
                    _block_spec((TM, D_pad), lambda i: (i, 0),
                                buffers=None if x_buffers == 2 else x_buffers),
                    _block_spec((D_pad, D_pad), lambda i: (0, 0), buffers=1),
                    _block_spec((1, D_pad), lambda i: (0, 0), buffers=1),
                ],
                out_specs=pl.BlockSpec((TM, D_pad), lambda i: (i, 0)),
            ),
            compiler_params=pltpu.CompilerParams(
                dimension_semantics=("parallel",),
                vmem_limit_bytes=vmem_limit,
            ),
            cost_estimate=cost,
        )(x2d, w_p, b2d)
    else:
        grid_k = D_pad // TK
        kernel = functools.partial(_residual_linear_ktiled_kernel,
                                   matmul_dtype=matmul_dtype)
        out2d = pl.pallas_call(
            kernel,
            out_shape=jax.ShapeDtypeStruct((M, D_pad), x.dtype),
            grid_spec=pltpu.PrefetchScalarGridSpec(
                num_scalar_prefetch=0,
                grid=(grid_m, grid_k),
                in_specs=[
                    pl.BlockSpec((TM, TK), lambda i, k: (i, k)),     # x K-slab
                    pl.BlockSpec((TM, D_pad), lambda i, k: (i, 0)),  # x rows (residual)
                    pl.BlockSpec((D_pad, TK), lambda i, k: (0, k)),  # W K-slab
                    _block_spec((1, D_pad), lambda i, k: (0, 0), buffers=1),
                ],
                out_specs=pl.BlockSpec((TM, D_pad), lambda i, k: (i, 0)),
                scratch_shapes=[pltpu.VMEM((TM, D_pad), jnp.float32)],
            ),
            compiler_params=pltpu.CompilerParams(
                dimension_semantics=("parallel", "arbitrary"),
                vmem_limit_bytes=vmem_limit,
            ),
            cost_estimate=cost,
        )(x2d, x2d, w_p, b2d)

    if D_pad != D:
        out2d = out2d[:, :D]
    return out2d.reshape(B, S, D)


if __name__ == "__main__":
    B, S, D = 2, 8, 32

    key = jax.random.PRNGKey(0)
    kx, kw, kb = jax.random.split(key, 3)

    x = jax.random.normal(kx, (B, S, D), dtype=jnp.float32)
    # Deterministic synthetic parameters for the wrapped Linear module
    # (torch Linear weight shape: (out_features, in_features)).
    weight = jax.random.normal(kw, (D, D), dtype=jnp.float32) * 0.05
    bias = jax.random.normal(kb, (D,), dtype=jnp.float32) * 0.05

    # Reference in plain JAX: x + (x @ W.T + b)
    ref = x + (jnp.einsum("bsd,od->bso", x, weight) + bias)

    # 1) resident-weight path, exact f32 matmul.
    out = jax.block_until_ready(residual_block(x, weight, bias, matmul_dtype=None))
    assert jnp.allclose(out, ref, atol=1e-5, rtol=1e-5), "resident f32 path mismatch"

    # 2) streaming (K-tiled, P3) fallback path, exact f32 matmul.
    out_s = jax.block_until_ready(
        residual_block(x, weight, bias, matmul_dtype=None, force_streaming=True))
    assert jnp.allclose(out_s, ref, atol=1e-5, rtol=1e-5), "streaming f32 path mismatch"

    # 3) bf16-operand matmul (f32 accumulation + f32 residual/bias).
    out_bf = jax.block_until_ready(
        residual_block(x, weight, bias, matmul_dtype=jnp.bfloat16))
    assert jnp.allclose(out_bf, ref, atol=2e-2, rtol=2e-2), "bf16 matmul path mismatch"

    print("KERNEL_OK")
</pallas_src>

<mosaic_0001>
module attributes {stable_mosaic.version = 11 : i64} {
  func.func @_residual_linear_resident_kernel(%arg0: i32, %arg1: memref<8x128xf32, #tpu.memory_space<vmem>>, %arg2: memref<128x128xf32, #tpu.memory_space<vmem>>, %arg3: memref<1x128xf32, #tpu.memory_space<vmem>>, %arg4: memref<8x128xf32, #tpu.memory_space<vmem>>) attributes {dimension_semantics = [#tpu.dimension_semantics<parallel>], iteration_bounds = array<i64: 2>, scalar_prefetch = 0 : i64, scratch_operands = 0 : i64, tpu.core_type = #tpu.core_type<tc>, window_params = [{transform_indices = @transform_0, window_bounds = array<i64: 8, 128>}, {pipeline_mode = #tpu.pipeline_mode<synchronous>, transform_indices = @transform_1, window_bounds = array<i64: 128, 128>}, {pipeline_mode = #tpu.pipeline_mode<synchronous>, transform_indices = @transform_2, window_bounds = array<i64: 1, 128>}, {transform_indices = @transform_3, window_bounds = array<i64: 8, 128>}]} {
    %c0 = arith.constant 0 : index
    %c0_0 = arith.constant 0 : index
    %0 = vector.load %arg1[%c0, %c0_0] : memref<8x128xf32, #tpu.memory_space<vmem>>, vector<8x128xf32>
    %c0_1 = arith.constant 0 : index
    %c0_2 = arith.constant 0 : index
    %1 = vector.load %arg2[%c0_1, %c0_2] : memref<128x128xf32, #tpu.memory_space<vmem>>, vector<128x128xf32>
    %cst = arith.constant dense<0.000000e+00> : vector<8x128xf32>
    %2 = tpu.matmul %0, %1, %cst {dimension_numbers = #tpu.dot_dimension_numbers<[1], [1], [0], [0], [0, 0, 1, 0], [], []>} : vector<8x128xf32>, vector<128x128xf32>, vector<8x128xf32> -> vector<8x128xf32>
    %3 = arith.addf %0, %2 : vector<8x128xf32>
    %c0_3 = arith.constant 0 : index
    %c0_4 = arith.constant 0 : index
    %4 = vector.load %arg3[%c0_3, %c0_4] : memref<1x128xf32, #tpu.memory_space<vmem>>, vector<1x128xf32>
    %5 = vector.broadcast %4 : vector<1x128xf32> to vector<8x128xf32>
    %6 = arith.addf %3, %5 : vector<8x128xf32>
    %c0_5 = arith.constant 0 : index
    %c0_6 = arith.constant 0 : index
    %7 = vector.load %arg4[%c0_5, %c0_6] : memref<8x128xf32, #tpu.memory_space<vmem>>, vector<8x128xf32>
    tpu.vector_store %arg4[%c0_5, %c0_6], %6 {strides = array<i32>} : memref<8x128xf32, #tpu.memory_space<vmem>>, vector<8x128xf32>,
    return
  }
  func.func @transform_0(%arg0: i32) -> (i32, i32) {
    %c0_i32 = arith.constant 0 : i32
    %c0_i32_0 = arith.constant 0 : i32
    return %arg0, %c0_i32 : i32, i32
  }
  func.func @transform_1(%arg0: i32) -> (i32, i32) {
    %c0_i32 = arith.constant 0 : i32
    %c0_i32_0 = arith.constant 0 : i32
    %c0_i32_1 = arith.constant 0 : i32
    return %c0_i32, %c0_i32_0 : i32, i32
  }
  func.func @transform_2(%arg0: i32) -> (i32, i32) {
    %c0_i32 = arith.constant 0 : i32
    %c0_i32_0 = arith.constant 0 : i32
    %c0_i32_1 = arith.constant 0 : i32
    return %c0_i32, %c0_i32_0 : i32, i32
  }
  func.func @transform_3(%arg0: i32) -> (i32, i32) {
    %c0_i32 = arith.constant 0 : i32
    %c0_i32_0 = arith.constant 0 : i32
    return %arg0, %c0_i32 : i32, i32
  }
}

</mosaic_0001>

<bundles_post_ra>
// kernel: tpu_custom_call.1
= control target key start
LH: loop header
LB: loop body
LE: loop exit
PB: predicated region body
PF: predicated region fallthrough
CT: control target
= control target key end

     0   :  { %8 = vsyncpa [#allocation3], 0  ;;  %s835_s0 = inlined_call_operand.hbm [shape: f32[16,128], index: 0, kind: input, shape index: {}]   ;;  %s836_s1 = inlined_call_operand.hbm [shape: f32[128,128], index: 1, kind: input, shape index: {}]   ;;  %s837_s2 = inlined_call_operand.vmem [shape: f32[1,128], index: 2, kind: input, shape index: {}]   ;;  %s838_s3 = inlined_call_operand.hbm [shape: f32[16,128], index: 3, kind: output, shape index: {}]  }
   0x1   :  { %10 = vsyncpa [#allocation3 + $0x1], 0 }
   0x2   :  { %11 = vsyncpa [#allocation6], 0 }
   0x3   :  { %12 = vsyncpa [#allocation4], 0 }
   0x4   :  { %14 = vsyncpa [#allocation4 + $0x1], 0  ;;  %s671_s12 = smov 0   ;;  %s673_s13 = smov 0  }
   0x5   :  { %s675_s14 = smov 0   ;;  %s677_s15 = smov 0  }
   0x6 LB: > { %s692_s16 = sadd.s32 4294967295, %s642_s15   ;;  %s392_s17 = sadd.s32 4294967294, %s642_s15   ;;  %s642_s15 = sphi %s677_s15, %s860_s15   ;;  %s638_s14 = sphi %s675_s14, %s859_s14   ;;  %s634_s13 = sphi %s673_s13, %s858_s13   ;;  %s630_s12 = sphi %s671_s12, %s857_s12  }
   0x7   : > { %p40_p0 = scmp.ne.s32.totalorder %s634_s13, %s630_s12  ;;  %p839_p1 = scmp.eq.s32.totalorder %s692_s16, 0 }
   0x8   : > { %p112_p3 = scmp.eq.s32.totalorder %s392_s17, 1  ;;  %p393_p5 = scmp.ge.s32.totalorder %s642_s15, 1 }
   0x9   : > { %p701_p4 = por %p839_p1, %p40_p0  ;;  %p119_p7 = scmp.lt.s32.totalorder %s642_s15, 3 }
   0xa   : > { %p706_p6 = por %p112_p3, %p40_p0  ;;  %s644_s21 = smov [#allocation5]  }
   0xb   : > { %s843_s18 = scalar_select %p701_p4, 1, 0 }
   0xc   : > { %s844_s19 = scalar_select %p706_p6, 1, 0 }
   0xd   : > { %p711_p8 = pnand %p393_p5, %p119_p7  ;;  %s131_s22 = sshll.u32 %s644_s21, 4  ;;  %s132_s22 = int_to_ptr.vmem [resolvable:$true] %s131_s22 }
   0xe   : > { %s725_s24 = sadd.s32 1, %s642_s15   ;;  %s27_s25 = sadd.s32 1, %s638_s14 }
   0xf   : > { %s845_s20 = scalar_select %p711_p8, 1, 0 }
  0x10   : > { %p467_p9 = pneg %p711_p8  ;;  %s24_s26 = ssub.s32 %s642_s15, %s725_s24 }
  0x11   : > { %s531_s27 = scalar_lea.vmem %s132_s22, 2048  ;;  %p539_p5 = scmp.lt.s32.totalorder %s132_s22, %s132_s22 }
  0x12   : > { %p720_p11 = pnand %p467_p9, %p839_p1  ;;  %p532_p13 = scmp.ne.s32.totalorder %s132_s22, %s531_s27 }
  0x13   : > { %p540_p7 = scmp.lt.s32.totalorder %s531_s27, %s531_s27 }
  0x14   : > { %p522_p12 = pneg %p720_p11 }
  0x15   : > { %p541_p10 = por %p540_p7, %p539_p5 }
  0x16   : > { %p534_p0 = pnand %p532_p13, %p522_p12 }
  0x18   : > { %p535_p3 = pneg %p534_p0 }
  0x1a   : > { %p542_p2 = pnand %p541_p10, %p535_p3 }
  0x1c   : > { %545 = shalt.err (!%p542_p2)
}
  0x1d   : > { %s645_s28 = smov 128   ;;  %s646_s29 = smov 8  }
  0x1e   : > { %470 = dma.hbm_to_vmem [thread:$0]  (!%p720_p11), %s836_s1, 2048, %s132_s22, [#allocation6], %s645_s28, %s645_s28, %s646_s29  }
  0x1f   : > { %p25_p9 = scmp.eq.s32.totalorder %s24_s26, 0  ;;  %p34_p12 = scmp.ne.s32.totalorder %s638_s14, %s634_s13 }
  0x20   : > { %p35_p10 = scmp.eq.s32.totalorder %s642_s15, 0  ;;  %p480_p2 = scmp.lt.s32.totalorder %s642_s15, 2 }
  0x21   : > { %s742_s5 = scalar_select %p25_p9, %s638_s14, %s27_s25  }
  0x22   : > { %p36_p13 = por %p35_p10, %p34_p12  ;;  %p847_p0 = scmp.eq.s32.totalorder %s692_s16, 1 }
  0x23   : > { %s148_s7 = sand.u32 1, %s638_s14   ;;  %s397_s8 = sshll.u32 %s642_s15, 7 }
  0x24   : > { %p746_p3 = por %p847_p0, %p34_p12  ;;  %s396_s9 = sshll.u32 %s148_s7, 3 }
  0x25   : > { %s755_s17 = scalar_lea.hbm %s835_s0, %s397_s8  ;;  %s152_s21 = scalar_lea.vmem [#allocation2], %s396_s9 }
  0x26   : > { %s848_s6 = scalar_select %p746_p3, 1, 0 }
  0x27   : > { %s159_s22 = sshll.u32 %s152_s21, 4  ;;  %p757_p11 = pnand %p480_p2, %p36_p13  ;;  %s160_s22 = int_to_ptr.vmem [resolvable:$true] %s159_s22 }
  0x28   : > { %s149_s25 = scalar_lea.sflag [#allocation3], %s148_s7  ;;  %s546_s26 = scalar_lea.hbm %s755_s17, 128 }
  0x29   : > { %p547_p5 = scmp.ne.s32.totalorder %s755_s17, %s546_s26  ;;  %p548_p7 = pneg %p757_p11 }
  0x2a   : > { %s551_s29 = scalar_lea.hbm %s835_s0, 256  ;;  %p552_p10 = scmp.lt.s32.totalorder %s755_s17, %s835_s0 }
  0x2b   : > { %p549_p9 = pnand %p548_p7, %p547_p5  ;;  %p553_p2 = scmp.lt.s32.totalorder %s551_s29, %s546_s26 }
  0x2d   : > { %p550_p12 = pneg %p549_p9  ;;  %p554_p13 = por %p553_p2, %p552_p10 }
  0x2f   : > { %p555_p0 = pnand %p554_p13, %p550_p12 }
  0x31   : > { %558 = shalt.err (!%p555_p0)
}
  0x32   : > { %s559_s8 = scalar_lea.vmem %s160_s22, 128  ;;  %s647_s7 = smov [#allocation2]  }
  0x33   : > { %p560_p1 = scmp.ne.s32.totalorder %s160_s22, %s559_s8  ;;  %s564_s9 = sshll.u32 %s647_s7, 4  ;;  %s565_s9 = int_to_ptr.vmem [resolvable:$false] %s564_s9 }
  0x34   : > { %s566_s10 = scalar_lea.vmem %s565_s9, 256  ;;  %p567_p5 = scmp.lt.s32.totalorder %s160_s22, %s565_s9 }
  0x35   : > { %p562_p6 = pnand %p560_p1, %p548_p7  ;;  %p568_p9 = scmp.lt.s32.totalorder %s566_s10, %s559_s8 }
  0x37   : > { %p563_p3 = pneg %p562_p6  ;;  %p569_p4 = por %p568_p9, %p567_p5 }
  0x39   : > { %p570_p8 = pnand %p569_p4, %p563_p3 }
  0x3b   : > { %573 = shalt.err (!%p570_p8)
}
  0x3c   : > { %474 = dma.hbm_to_vmem [thread:$0]  (!%p757_p11), %s755_s17, 128, %s160_s22, %s149_s25  }
  0x3d   : > { %p850_p12 = scmp.ne.s32.totalorder %s845_s20, 0 }
  0x3e   : > { %s778_s11 = sand.u32 (!%p850_p12), 1, %s634_s13   ;;  %p851_p1 = scmp.ne.s32.totalorder (!%p850_p12), %s843_s18, 0 }
  0x3f   : > { %168 = sbr.rel (%p850_p12) target bundleno = 347 (0x15b), region = 32  ;;  %s399_s21 = sshll.u32 (!%p850_p12), %s778_s11, 3 }
  0x40   : > { %s171_s26 = scalar_lea.sflag (!%p850_p12), [#allocation3], %s778_s11  ;;  %s784_s27 = scalar_lea.vmem (!%p850_p12), [#allocation2], %s399_s21 }
  0x44   : > { %617 = dma.done.wait (%p851_p1), %s171_s26, 128  }
  0x45   : > { %619 = vsyncadd (%p851_p1), %s171_s26, 4294967168  ;;  %p852_p4 = scmp.eq.s32.totalorder %s692_s16, 0 }
  0x47   : > { %621 = dma.done.wait (%p852_p4), [#allocation6], 2048   ;;  %p853_p6 = pmov %p852_p4 }
  0x48   : > { %v648_v0 = vmov 0.0   ;;  %vm649_vm0 = vmmov 0   ;;  %v217_v1 = vld [vmem:[#allocation5 + $0x78] sm:$0xff]  ;;  %v216_v2 = vld [vmem:[#allocation5 + $0x70] sm:$0xff]  ;;  %v215_v3 = vld [vmem:[#allocation5 + $0x68] sm:$0xff]  ;;  %s404_s17 = sshll.u32 %s692_s16, 7 }
  0x49   : > { %623 = vsyncadd (%p853_p6), [#allocation6], 4294965248  ;;  %424 = vmatprep.subr.mxu0 %v648_v0  ;;  %456 = vmatprep.mubr.msk.f32.mxu0 %vm649_vm0, %v648_v0  ;;  %v214_v4 = vld [vmem:[#allocation5 + $0x60] sm:$0xff]  ;;  %v213_v5 = vld [vmem:[#allocation5 + $0x58] sm:$0xff]  ;;  %s200_s22 = scalar_lea.vmem [#allocation7], %s399_s21  ;;  %s310_s29 = scalar_lea.hbm %s838_s3, %s404_s17 }
  0x4a   : > { %425 = vmatpush3.xpose.msra.mxu0 %v217_v1  ;;  %v212_v6 = vld [vmem:[#allocation5 + $0x50] sm:$0xff]  ;;  %v211_v7 = vld [vmem:[#allocation5 + $0x48] sm:$0xff]  ;;  %v210_v8 = vld [vmem:[#allocation5 + $0x40] sm:$0xff]  ;;  %s312_s23 = sshll.u32 %s200_s22, 4  ;;  %s299_s30 = scalar_lea.sflag [#allocation4], %s778_s11  ;;  %s313_s23 = int_to_ptr.vmem [resolvable:$true] %s312_s23 }
  0x4b   : > { %426 = vmatprep.subr.mxu0 %v648_v0  ;;  %v209_v9 = vld [vmem:[#allocation5 + $0x38] sm:$0xff]  ;;  %v208_v10 = vld [vmem:[#allocation5 + $0x30] sm:$0xff]  ;;  %v207_v11 = vld [vmem:[#allocation5 + $0x28] sm:$0xff]  ;;  %s574_s4 = scalar_lea.vmem %s313_s23, 128  ;;  %p854_p3 = scmp.ne.s32.totalorder %s848_s6, 0 }
  0x4c   : > { %v206_v12 = vld [vmem:[#allocation5 + $0x20] sm:$0xff]  ;;  %v205_v13 = vld [vmem:[#allocation5 + $0x18] sm:$0xff]  ;;  %v204_v14 = vld [vmem:[#allocation5 + $0x10] sm:$0xff]  ;;  %p575_p8 = scmp.ne.s32.totalorder %s313_s23, %s574_s4  ;;  %s650_s8 = smov [#allocation7]  }
  0x4d   : > { %v203_v15 = vld [vmem:[#allocation5 + $0x8] sm:$0xff]  ;;  %v202_v16 = vld [vmem:[#allocation5] sm:$0xff]  ;;  %v201_v17 = vld [vmem:[%s784_s27] sm:$0xff]  ;;  %s578_s16 = sshll.u32 %s650_s8, 4  ;;  %s579_s16 = int_to_ptr.vmem [resolvable:$false] %s578_s16 }
  0x4e   : > { %427 = vmatpush3.xpose.msra.mxu0 %v216_v2  ;;  %v402_v19 = vld [vmem:[%s837_s2] ss:$0 sm:$0xff]  ;;  %p576_p11 = pnand %p575_p8, %p854_p3  ;;  %s580_s7 = scalar_lea.vmem %s579_s16, 256 }
  0x4f   : > { %428 = vmatprep.subr.mxu0 %v648_v0  ;;  %p581_p10 = scmp.lt.s32.totalorder %s313_s23, %s579_s16  ;;  %p582_p2 = scmp.lt.s32.totalorder %s580_s7, %s574_s4 }
  0x50   : > { %p577_p7 = pneg %p576_p11 }
  0x51   : > { %p583_p13 = por %p582_p2, %p581_p10 }
  0x52   : > { %429 = vmatpush3.xpose.msra.mxu0 %v215_v3 }
  0x53   : > { %430 = vmatprep.subr.mxu0 %v648_v0  ;;  %p584_p0 = pnand %p583_p13, %p577_p7 }
  0x56   : > { %431 = vmatpush3.xpose.msra.mxu0 %v214_v4 }
  0x57   : > { %432 = vmatprep.subr.mxu0 %v648_v0 }
  0x5a   : > { %433 = vmatpush3.xpose.msra.mxu0 %v213_v5 }
  0x5b   : > { %434 = vmatprep.subr.mxu0 %v648_v0 }
  0x5e   : > { %435 = vmatpush3.xpose.msra.mxu0 %v212_v6 }
  0x5f   : > { %436 = vmatprep.subr.mxu0 %v648_v0 }
  0x62   : > { %437 = vmatpush3.xpose.msra.mxu0 %v211_v7 }
  0x63   : > { %438 = vmatprep.subr.mxu0 %v648_v0 }
  0x66   : > { %439 = vmatpush3.xpose.msra.mxu0 %v210_v8 }
  0x67   : > { %440 = vmatprep.subr.mxu0 %v648_v0 }
  0x6a   : > { %441 = vmatpush3.xpose.msra.mxu0 %v209_v9 }
  0x6b   : > { %442 = vmatprep.subr.mxu0 %v648_v0 }
  0x6e   : > { %443 = vmatpush3.xpose.msra.mxu0 %v208_v10 }
  0x6f   : > { %444 = vmatprep.subr.mxu0 %v648_v0 }
  0x72   : > { %445 = vmatpush3.xpose.msra.mxu0 %v207_v11 }
  0x73   : > { %446 = vmatprep.subr.mxu0 %v648_v0 }
  0x76   : > { %447 = vmatpush3.xpose.msra.mxu0 %v206_v12 }
  0x77   : > { %448 = vmatprep.subr.mxu0 %v648_v0 }
  0x7a   : > { %449 = vmatpush3.xpose.msra.mxu0 %v205_v13 }
  0x7b   : > { %450 = vmatprep.subr.mxu0 %v648_v0 }
  0x7e   : > { %451 = vmatpush3.xpose.msra.mxu0 %v204_v14 }
  0x7f   : > { %452 = vmatprep.subr.mxu0 %v648_v0 }
  0x82   : > { %453 = vmatpush3.xpose.msra.mxu0 %v203_v15 }
  0x83   : > { %454 = vmatprep.subr.mxu0 %v648_v0 }
  0x86   : > { %455 = vmatpush3.xpose.msra.mxu0 %v202_v16 }
  0x89   : > { %457 = vmatmul.mubr.f32.vlgmr.msra.gmra.mxu0 %v201_v17 }
 0x149   : > { %v284_v18 = vpop.f32.mrf.mxu0 }
 0x14a   : > { %v288_v20 = vadd.f32 %v284_v18, %v201_v17 }
 0x14b   : > { %v458_v21 = vpop.f32.mrf.mxu0 }
 0x14c   : > { %v296_v22 = vadd.f32 %v402_v19, %v288_v20 }
 0x14e   : > { %297 = vst [vmem:[%s200_s22] sm:$0xff] %v296_v22 }
 0x14f   : > { %587 = shalt.err (!%p584_p0)
}
 0x150   : > { %s588_s9 = scalar_lea.hbm %s310_s29, 128  ;;  %s592_s21 = scalar_lea.hbm %s838_s3, 256 }
 0x151   : > { %p589_p5 = scmp.ne.s32.totalorder %s310_s29, %s588_s9  ;;  %p593_p1 = scmp.lt.s32.totalorder %s310_s29, %s838_s3 }
 0x152   : > { %p594_p4 = scmp.lt.s32.totalorder %s592_s21, %s588_s9 }
 0x153   : > { %p590_p9 = pnand %p589_p5, %p854_p3 }
 0x154   : > { %p595_p6 = por %p594_p4, %p593_p1 }
 0x155   : > { %p591_p12 = pneg %p590_p9 }
 0x157   : > { %p596_p8 = pnand %p595_p6, %p591_p12 }
 0x159   : > { %599 = shalt.err (!%p596_p8)
}
 0x15a   : > { %465 = dma.vmem_to_hbm [thread:$0]  (%p854_p3), %s313_s23, 128, %s310_s29, %s299_s30  }
 0x15b PF: > { %s324_s18 = sand.u32 1, %s630_s12   ;;  %p855_p11 = scmp.ne.s32.totalorder %s844_s19, 0 }
 0x15c   : > { %p856_p7 = scmp.ge.s32.totalorder %s642_s15, 2  ;;  %s325_s20 = scalar_lea.sflag [#allocation4], %s324_s18 }
 0x15e   : > { %p476_p10 = pnand %p856_p7, %p855_p11 }
 0x160   : > { %p477_p2 = pneg %p476_p10 }
 0x162   : > { %625 = dma.done.wait (%p477_p2), %s325_s20, 128  }
 0x163   : > { %627 = vsyncadd (%p477_p2), %s325_s20, 4294967168  ;;  %p17_p13 = scmp.ge.s32.totalorder %s725_s24, 4   ;;  %s857_s12 = smov %s634_s13 }
 0x164   : > { %s858_s13 = smov %s638_s14  ;;  %s859_s14 = smov %s742_s5 }
 0x165   : > { %s860_s15 = smov %s725_s24  ;;  %19 = sbr.rel (!%p17_p13) target bundleno = 6 (0x6), region = 81 }
 0x16a   :  { %330 = vsyncpa [#allocation3], 1 }
 0x16b   :  { %332 = vsyncpa [#allocation3 + $0x1], 1 }
 0x16c   :  { %333 = vsyncpa [#allocation6], 1 }
 0x16d   :  { %334 = vsyncpa [#allocation4], 1 }
 0x16e   :  { %336 = vsyncpa [#allocation4 + $0x1], 1 }

</bundles_post_ra>
